<compile_context>
chip_gen: v7x
topology: tpu7x:2x2x1
jax: 0.10.0
libtpu: 0.0.40
codegen_flags: <defaults>
</compile_context>

<pallas_src>
import functools

import jax
import jax.numpy as jnp
from jax.experimental import pallas as pl
from jax.experimental.pallas import tpu as pltpu


# ---------------------------------------------------------------------------
# Fused Pallas kernel: one grid step = one batch element, all GLU layers
# ---------------------------------------------------------------------------
def _stsgcm_kernel(*refs, num_layers, num_vertices):
    """
    refs layout:
      refs[0]              : adj (3N, 3N)                     bf16
      refs[1]              : x   (1, 3N, Cin)                 bf16 (this batch)
      refs[2 + 4*i + 0..3] : Wl_i (Cin_i, Cout), Wr_i (Cin_i, Cout),
                             bl_i (1, Cout),     br_i (1, Cout)
      refs[2 + 4*L]        : out (1, N, Cout)                 f32
    """
    adj_ref = refs[0]
    x_ref = refs[1]
    o_ref = refs[2 + 4 * num_layers]

    N = num_vertices
    adj = adj_ref[...]                 # (3N, 3N), resident for all layers
    h = x_ref[0]                       # (3N, Cin), one batch element

    mx = None
    for i in range(num_layers):        # static unroll over the few GLU layers
        wl_ref, wr_ref, bl_ref, br_ref = refs[2 + 4 * i: 6 + 4 * i]
        mxu_dtype = wl_ref.dtype
        last = i == num_layers - 1

        # Graph aggregation. Only the final layer's middle N rows reach the
        # output, so the last aggregation drops the other 2N rows (3x fewer
        # MXU FLOPs on the last layer).
        a = adj[N:2 * N, :] if last else adj
        agg = jnp.dot(a, h, preferred_element_type=jnp.float32)

        # GLU via two dense matmuls (split weights -> no mid-vreg lane split;
        # fuse them into one (Cin, 2*Cout) weight when Cout % 128 == 0).
        agg = agg.astype(mxu_dtype)
        zl = jnp.dot(agg, wl_ref[...], preferred_element_type=jnp.float32) + bl_ref[...]
        zr = jnp.dot(agg, wr_ref[...], preferred_element_type=jnp.float32) + br_ref[...]
        g = zl * jax.nn.sigmoid(zr)    # f32 elementwise (VPU + EUP)

        if last:
            sl = g                     # already just the middle N vertices
        else:
            sl = g[N:2 * N, :]         # (N, Cout) middle slice for the max
            h = g.astype(mxu_dtype)    # feed next layer's MXU in bf16
        mx = sl if mx is None else jnp.maximum(mx, sl)

    o_ref[0] = mx.astype(o_ref.dtype)


# ---------------------------------------------------------------------------
# One-time parameter preprocessing (hoisted out of the per-call path)
# ---------------------------------------------------------------------------
def prepare_params(weights, biases, out_dims, mxu_dtype=jnp.bfloat16):
    """weights[i]: (Cin_i, 2*Cout_i) pre-transposed nn.Linear weight;
       biases[i]:  (2*Cout_i,).  Returns the flat list of kernel operands."""
    layer_args = []
    for W, bvec, od in zip(weights, biases, out_dims):
        layer_args += [
            W[:, :od].astype(mxu_dtype),                      # Wl (Cin, Cout)
            W[:, od:].astype(mxu_dtype),                      # Wr (Cin, Cout)
            bvec[:od].reshape(1, od).astype(jnp.float32),     # bl
            bvec[od:].reshape(1, od).astype(jnp.float32),     # br
        ]
    return layer_args


# ---------------------------------------------------------------------------
# Wrapper
# ---------------------------------------------------------------------------
def stsgcm_forward(adj, x_nbc, layer_args, out_dims, num_vertices, mask=None,
                   mxu_dtype=jnp.bfloat16):
    """
    adj       : (3N, 3N) f32
    x_nbc     : (3N, B, Cin)  -- PyTorch layout
    layer_args: flat list [Wl_0, Wr_0, bl_0, br_0, ...] from prepare_params
    returns   : (N, B, Cout) f32
    """
    if mask is not None:
        adj = adj * mask                                      # matches `adj * mask`

    threeN, B, cin0 = x_nbc.shape
    N = num_vertices
    num_layers = len(out_dims)
    cout = out_dims[-1]
    assert threeN == 3 * N, (threeN, N)
    # torch.max over the stacked layer outputs requires equal out dims.
    assert all(od == cout for od in out_dims), out_dims

    adj_m = adj.astype(mxu_dtype)
    # (3N, B, Cin) -> (B, 3N, Cin): batch-major so each grid step owns one
    # batch element (one-time layout op; a real pipeline keeps x batch-major).
    x_b = jnp.transpose(x_nbc, (1, 0, 2)).astype(mxu_dtype)

    in_specs = [
        pl.BlockSpec((threeN, threeN), lambda b: (0, 0)),      # adj, resident
        pl.BlockSpec((1, threeN, cin0), lambda b: (b, 0, 0)),  # x, one batch/step
    ]
    for li in range(num_layers):
        wl, wr, bl, br = layer_args[4 * li: 4 * li + 4]
        in_specs += [
            pl.BlockSpec(wl.shape, lambda b: (0, 0)),
            pl.BlockSpec(wr.shape, lambda b: (0, 0)),
            pl.BlockSpec(bl.shape, lambda b: (0, 0)),
            pl.BlockSpec(br.shape, lambda b: (0, 0)),
        ]

    # Scoped-VMEM budget from the actual operand set (+ double buffering and
    # f32 intermediates); the 16/32 MiB defaults are not the physical size.
    nbytes = lambda a: int(a.size) * a.dtype.itemsize
    block_bytes = (
        nbytes(adj_m)
        + threeN * cin0 * adj_m.dtype.itemsize                # one x block
        + sum(nbytes(a) for a in layer_args)
        + N * cout * 4                                        # one out block
    )
    max_c = max([cin0] + list(out_dims))
    scratch_bytes = 6 * threeN * max(2 * cout, max_c) * 4     # live f32 intermediates
    vmem_limit = min(max(2 * (2 * block_bytes + scratch_bytes), 4 << 20), 64 << 20)

    out_b = pl.pallas_call(
        functools.partial(_stsgcm_kernel, num_layers=num_layers, num_vertices=N),
        out_shape=jax.ShapeDtypeStruct((B, N, cout), jnp.float32),
        grid_spec=pltpu.PrefetchScalarGridSpec(
            num_scalar_prefetch=0,
            grid=(B,),                                        # batch axis
            in_specs=in_specs,
            # TODO(synk): for production, pack several batch elements per block
            # so the output's last dims become lane-dense (multiple of 128).
            out_specs=pl.BlockSpec((1, N, cout), lambda b: (b, 0, 0)),
        ),
        compiler_params=pltpu.CompilerParams(
            dimension_semantics=("parallel",),                # megacore on v7x
            vmem_limit_bytes=int(vmem_limit),
        ),
    )(adj_m, x_b, *layer_args)

    # (B, N, Cout) -> (N, B, Cout) to match the PyTorch module's return layout.
    return jnp.transpose(out_b, (1, 0, 2))


# ---------------------------------------------------------------------------
# Pure-JAX reference (mirrors the PyTorch module) for verification
# ---------------------------------------------------------------------------
def stsgcm_reference(adj, x_nbc, weights, biases, out_dims, num_vertices,
                     mask=None, matmul_dtype=None):
    """matmul_dtype=None     -> plain f32 math (the PyTorch semantics).
       matmul_dtype=bfloat16 -> same casting points as the Pallas kernel
                                (bf16 MXU operands, f32 accumulation)."""
    if mask is not None:
        adj = adj * mask
    N = num_vertices
    h = x_nbc
    concat = []
    for W, b, od in zip(weights, biases, out_dims):
        if matmul_dtype is None:
            agg = jnp.einsum('nm,mbc->nbc', adj, h)
            z = agg @ W + b
        else:
            agg = jnp.einsum('nm,mbc->nbc', adj.astype(matmul_dtype),
                             h.astype(matmul_dtype),
                             preferred_element_type=jnp.float32)
            z = jnp.einsum('nbc,cd->nbd', agg.astype(matmul_dtype),
                           W.astype(matmul_dtype),
                           preferred_element_type=jnp.float32) + b
        lhs, rhs = z[..., :od], z[..., od:]
        h = lhs * jax.nn.sigmoid(rhs)
        concat.append(h[N:2 * N])                             # (N, B, od)
    return jnp.max(jnp.stack(concat, axis=0), axis=0)         # (N, B, Cout)


# ---------------------------------------------------------------------------
# main
# ---------------------------------------------------------------------------
if __name__ == "__main__":
    N = 8             # num_of_vertices (multiple of 8 -> aligned middle slice)
    B = 2             # batch
    in_dim = 16
    out_dims = [32, 32, 32]   # max over layers requires equal out dims

    key = jax.random.PRNGKey(0)
    keys = jax.random.split(key, 2 + 2 * len(out_dims))
    k_adj, k_x = keys[0], keys[1]
    param_keys = keys[2:]

    adj = jax.random.uniform(k_adj, (3 * N, 3 * N), jnp.float32)
    x = jax.random.normal(k_x, (3 * N, B, in_dim), jnp.float32)

    # Deterministic nn.Linear-style init; weights stored pre-transposed (Cin, 2*Cout).
    dims = [in_dim] + out_dims
    weights, biases = [], []
    for i, od in enumerate(out_dims):
        cin = dims[i]
        bound = 1.0 / float(cin) ** 0.5
        W = jax.random.uniform(param_keys[2 * i], (cin, 2 * od), jnp.float32,
                               minval=-bound, maxval=bound)
        bvec = jax.random.uniform(param_keys[2 * i + 1], (2 * od,), jnp.float32,
                                  minval=-bound, maxval=bound)
        weights.append(W)
        biases.append(bvec)

    # One-time parameter preprocessing (hoisted out of the forward path).
    layer_args = prepare_params(weights, biases, out_dims)

    out = stsgcm_forward(adj, x, layer_args, out_dims, N)
    out = jax.block_until_ready(out)
    assert out.shape == (N, B, out_dims[-1]), out.shape

    # Precision-matched reference (bf16 MXU operands, f32 accumulate).
    ref_bf16 = stsgcm_reference(adj, x, weights, biases, out_dims, N,
                                matmul_dtype=jnp.bfloat16)
    assert jnp.allclose(out, ref_bf16, atol=2e-2, rtol=2e-2), \
        float(jnp.max(jnp.abs(out - ref_bf16)))

    # Loose sanity check against the full-f32 (PyTorch-equivalent) reference;
    # bf16 MXU operands make an exact 1e-4 match impossible by design.
    ref_f32 = stsgcm_reference(adj, x, weights, biases, out_dims, N)
    assert jnp.allclose(out, ref_f32, atol=2e-1, rtol=2e-1), \
        float(jnp.max(jnp.abs(out - ref_f32)))

    print("KERNEL_OK")
</pallas_src>

<mosaic_0001>
module attributes {stable_mosaic.version = 11 : i64} {
  func.func @_stsgcm_kernel(%arg0: i32, %arg1: memref<24x24xbf16, #tpu.memory_space<vmem>>, %arg2: memref<1x24x16xbf16, #tpu.memory_space<vmem>>, %arg3: memref<16x32xbf16, #tpu.memory_space<vmem>>, %arg4: memref<16x32xbf16, #tpu.memory_space<vmem>>, %arg5: memref<1x32xf32, #tpu.memory_space<vmem>>, %arg6: memref<1x32xf32, #tpu.memory_space<vmem>>, %arg7: memref<32x32xbf16, #tpu.memory_space<vmem>>, %arg8: memref<32x32xbf16, #tpu.memory_space<vmem>>, %arg9: memref<1x32xf32, #tpu.memory_space<vmem>>, %arg10: memref<1x32xf32, #tpu.memory_space<vmem>>, %arg11: memref<32x32xbf16, #tpu.memory_space<vmem>>, %arg12: memref<32x32xbf16, #tpu.memory_space<vmem>>, %arg13: memref<1x32xf32, #tpu.memory_space<vmem>>, %arg14: memref<1x32xf32, #tpu.memory_space<vmem>>, %arg15: memref<1x8x32xf32, #tpu.memory_space<vmem>>) attributes {dimension_semantics = [#tpu.dimension_semantics<parallel>], iteration_bounds = array<i64: 2>, scalar_prefetch = 0 : i64, scratch_operands = 0 : i64, tpu.core_type = #tpu.core_type<tc>, window_params = [{pipeline_mode = #tpu.pipeline_mode<synchronous>, transform_indices = @transform_0, window_bounds = array<i64: 24, 24>}, {transform_indices = @transform_1, window_bounds = array<i64: 1, 24, 16>}, {pipeline_mode = #tpu.pipeline_mode<synchronous>, transform_indices = @transform_2, window_bounds = array<i64: 16, 32>}, {pipeline_mode = #tpu.pipeline_mode<synchronous>, transform_indices = @transform_3, window_bounds = array<i64: 16, 32>}, {pipeline_mode = #tpu.pipeline_mode<synchronous>, transform_indices = @transform_4, window_bounds = array<i64: 1, 32>}, {pipeline_mode = #tpu.pipeline_mode<synchronous>, transform_indices = @transform_5, window_bounds = array<i64: 1, 32>}, {pipeline_mode = #tpu.pipeline_mode<synchronous>, transform_indices = @transform_6, window_bounds = array<i64: 32, 32>}, {pipeline_mode = #tpu.pipeline_mode<synchronous>, transform_indices = @transform_7, window_bounds = array<i64: 32, 32>}, {pipeline_mode = #tpu.pipeline_mode<synchronous>, transform_indices = @transform_8, window_bounds = array<i64: 1, 32>}, {pipeline_mode = #tpu.pipeline_mode<synchronous>, transform_indices = @transform_9, window_bounds = array<i64: 1, 32>}, {pipeline_mode = #tpu.pipeline_mode<synchronous>, transform_indices = @transform_10, window_bounds = array<i64: 32, 32>}, {pipeline_mode = #tpu.pipeline_mode<synchronous>, transform_indices = @transform_11, window_bounds = array<i64: 32, 32>}, {pipeline_mode = #tpu.pipeline_mode<synchronous>, transform_indices = @transform_12, window_bounds = array<i64: 1, 32>}, {pipeline_mode = #tpu.pipeline_mode<synchronous>, transform_indices = @transform_13, window_bounds = array<i64: 1, 32>}, {transform_indices = @transform_14, window_bounds = array<i64: 1, 8, 32>}]} {
    %c0 = arith.constant 0 : index
    %c0_0 = arith.constant 0 : index
    %0 = vector.load %arg1[%c0, %c0_0] : memref<24x24xbf16, #tpu.memory_space<vmem>>, vector<24x24xbf16>
    %c0_1 = arith.constant 0 : index
    %c0_2 = arith.constant 0 : index
    %c0_3 = arith.constant 0 : index
    %1 = vector.load %arg2[%c0_1, %c0_2, %c0_3] : memref<1x24x16xbf16, #tpu.memory_space<vmem>>, vector<1x24x16xbf16>
    %2 = vector.shape_cast %1 : vector<1x24x16xbf16> to vector<24x16xbf16>
    %cst = arith.constant dense<0.000000e+00> : vector<24x16xf32>
    %3 = tpu.matmul %0, %2, %cst {dimension_numbers = #tpu.dot_dimension_numbers<[1], [0], [0], [1], [0, 0, 1, 1], [], []>} : vector<24x24xbf16>, vector<24x16xbf16>, vector<24x16xf32> -> vector<24x16xf32>
    %4 = arith.truncf %3 : vector<24x16xf32> to vector<24x16xbf16>
    %c0_4 = arith.constant 0 : index
    %c0_5 = arith.constant 0 : index
    %5 = vector.load %arg3[%c0_4, %c0_5] : memref<16x32xbf16, #tpu.memory_space<vmem>>, vector<16x32xbf16>
    %cst_6 = arith.constant dense<0.000000e+00> : vector<24x32xf32>
    %6 = tpu.matmul %4, %5, %cst_6 {dimension_numbers = #tpu.dot_dimension_numbers<[1], [0], [0], [1], [0, 0, 1, 1], [], []>} : vector<24x16xbf16>, vector<16x32xbf16>, vector<24x32xf32> -> vector<24x32xf32>
    %c0_7 = arith.constant 0 : index
    %c0_8 = arith.constant 0 : index
    %7 = vector.load %arg5[%c0_7, %c0_8] : memref<1x32xf32, #tpu.memory_space<vmem>>, vector<1x32xf32>
    %8 = vector.broadcast %7 : vector<1x32xf32> to vector<24x32xf32>
    %9 = arith.addf %6, %8 : vector<24x32xf32>
    %c0_9 = arith.constant 0 : index
    %c0_10 = arith.constant 0 : index
    %10 = vector.load %arg4[%c0_9, %c0_10] : memref<16x32xbf16, #tpu.memory_space<vmem>>, vector<16x32xbf16>
    %cst_11 = arith.constant dense<0.000000e+00> : vector<24x32xf32>
    %11 = tpu.matmul %4, %10, %cst_11 {dimension_numbers = #tpu.dot_dimension_numbers<[1], [0], [0], [1], [0, 0, 1, 1], [], []>} : vector<24x16xbf16>, vector<16x32xbf16>, vector<24x32xf32> -> vector<24x32xf32>
    %c0_12 = arith.constant 0 : index
    %c0_13 = arith.constant 0 : index
    %12 = vector.load %arg6[%c0_12, %c0_13] : memref<1x32xf32, #tpu.memory_space<vmem>>, vector<1x32xf32>
    %13 = vector.broadcast %12 : vector<1x32xf32> to vector<24x32xf32>
    %14 = arith.addf %11, %13 : vector<24x32xf32>
    %15 = arith.negf %14 : vector<24x32xf32>
    %16 = math.exp %15 : vector<24x32xf32>
    %cst_14 = arith.constant 1.000000e+00 : f32
    %17 = vector.broadcast %cst_14 : f32 to vector<24x32xf32>
    %18 = arith.addf %17, %16 : vector<24x32xf32>
    %19 = arith.divf %17, %18 : vector<24x32xf32>
    %20 = arith.mulf %9, %19 : vector<24x32xf32>
    %21 = vector.extract_strided_slice %20 {offsets = [8, 0], sizes = [8, 32], strides = [1, 1]} : vector<24x32xf32> to vector<8x32xf32>
    %22 = arith.truncf %20 : vector<24x32xf32> to vector<24x32xbf16>
    %cst_15 = arith.constant dense<0.000000e+00> : vector<24x32xf32>
    %23 = tpu.matmul %0, %22, %cst_15 {dimension_numbers = #tpu.dot_dimension_numbers<[1], [0], [0], [1], [0, 0, 1, 1], [], []>} : vector<24x24xbf16>, vector<24x32xbf16>, vector<24x32xf32> -> vector<24x32xf32>
    %24 = arith.truncf %23 : vector<24x32xf32> to vector<24x32xbf16>
    %c0_16 = arith.constant 0 : index
    %c0_17 = arith.constant 0 : index
    %25 = vector.load %arg7[%c0_16, %c0_17] : memref<32x32xbf16, #tpu.memory_space<vmem>>, vector<32x32xbf16>
    %cst_18 = arith.constant dense<0.000000e+00> : vector<24x32xf32>
    %26 = tpu.matmul %24, %25, %cst_18 {dimension_numbers = #tpu.dot_dimension_numbers<[1], [0], [0], [1], [0, 0, 1, 1], [], []>} : vector<24x32xbf16>, vector<32x32xbf16>, vector<24x32xf32> -> vector<24x32xf32>
    %c0_19 = arith.constant 0 : index
    %c0_20 = arith.constant 0 : index
    %27 = vector.load %arg9[%c0_19, %c0_20] : memref<1x32xf32, #tpu.memory_space<vmem>>, vector<1x32xf32>
    %28 = vector.broadcast %27 : vector<1x32xf32> to vector<24x32xf32>
    %29 = arith.addf %26, %28 : vector<24x32xf32>
    %c0_21 = arith.constant 0 : index
    %c0_22 = arith.constant 0 : index
    %30 = vector.load %arg8[%c0_21, %c0_22] : memref<32x32xbf16, #tpu.memory_space<vmem>>, vector<32x32xbf16>
    %cst_23 = arith.constant dense<0.000000e+00> : vector<24x32xf32>
    %31 = tpu.matmul %24, %30, %cst_23 {dimension_numbers = #tpu.dot_dimension_numbers<[1], [0], [0], [1], [0, 0, 1, 1], [], []>} : vector<24x32xbf16>, vector<32x32xbf16>, vector<24x32xf32> -> vector<24x32xf32>
    %c0_24 = arith.constant 0 : index
    %c0_25 = arith.constant 0 : index
    %32 = vector.load %arg10[%c0_24, %c0_25] : memref<1x32xf32, #tpu.memory_space<vmem>>, vector<1x32xf32>
    %33 = vector.broadcast %32 : vector<1x32xf32> to vector<24x32xf32>
    %34 = arith.addf %31, %33 : vector<24x32xf32>
    %35 = arith.negf %34 : vector<24x32xf32>
    %36 = math.exp %35 : vector<24x32xf32>
    %cst_26 = arith.constant 1.000000e+00 : f32
    %37 = vector.broadcast %cst_26 : f32 to vector<24x32xf32>
    %38 = arith.addf %37, %36 : vector<24x32xf32>
    %39 = arith.divf %37, %38 : vector<24x32xf32>
    %40 = arith.mulf %29, %39 : vector<24x32xf32>
    %41 = vector.extract_strided_slice %40 {offsets = [8, 0], sizes = [8, 32], strides = [1, 1]} : vector<24x32xf32> to vector<8x32xf32>
    %42 = arith.truncf %40 : vector<24x32xf32> to vector<24x32xbf16>
    %43 = arith.maximumf %21, %41 : vector<8x32xf32>
    %44 = vector.extract_strided_slice %0 {offsets = [8, 0], sizes = [8, 24], strides = [1, 1]} : vector<24x24xbf16> to vector<8x24xbf16>
    %cst_27 = arith.constant dense<0.000000e+00> : vector<8x32xf32>
    %45 = tpu.matmul %44, %42, %cst_27 {dimension_numbers = #tpu.dot_dimension_numbers<[1], [0], [0], [1], [0, 0, 1, 1], [], []>} : vector<8x24xbf16>, vector<24x32xbf16>, vector<8x32xf32> -> vector<8x32xf32>
    %46 = arith.truncf %45 : vector<8x32xf32> to vector<8x32xbf16>
    %c0_28 = arith.constant 0 : index
    %c0_29 = arith.constant 0 : index
    %47 = vector.load %arg11[%c0_28, %c0_29] : memref<32x32xbf16, #tpu.memory_space<vmem>>, vector<32x32xbf16>
    %cst_30 = arith.constant dense<0.000000e+00> : vector<8x32xf32>
    %48 = tpu.matmul %46, %47, %cst_30 {dimension_numbers = #tpu.dot_dimension_numbers<[1], [0], [0], [1], [0, 0, 1, 1], [], []>} : vector<8x32xbf16>, vector<32x32xbf16>, vector<8x32xf32> -> vector<8x32xf32>
    %c0_31 = arith.constant 0 : index
    %c0_32 = arith.constant 0 : index
    %49 = vector.load %arg13[%c0_31, %c0_32] : memref<1x32xf32, #tpu.memory_space<vmem>>, vector<1x32xf32>
    %50 = vector.broadcast %49 : vector<1x32xf32> to vector<8x32xf32>
    %51 = arith.addf %48, %50 : vector<8x32xf32>
    %c0_33 = arith.constant 0 : index
    %c0_34 = arith.constant 0 : index
    %52 = vector.load %arg12[%c0_33, %c0_34] : memref<32x32xbf16, #tpu.memory_space<vmem>>, vector<32x32xbf16>
    %cst_35 = arith.constant dense<0.000000e+00> : vector<8x32xf32>
    %53 = tpu.matmul %46, %52, %cst_35 {dimension_numbers = #tpu.dot_dimension_numbers<[1], [0], [0], [1], [0, 0, 1, 1], [], []>} : vector<8x32xbf16>, vector<32x32xbf16>, vector<8x32xf32> -> vector<8x32xf32>
    %c0_36 = arith.constant 0 : index
    %c0_37 = arith.constant 0 : index
    %54 = vector.load %arg14[%c0_36, %c0_37] : memref<1x32xf32, #tpu.memory_space<vmem>>, vector<1x32xf32>
    %55 = vector.broadcast %54 : vector<1x32xf32> to vector<8x32xf32>
    %56 = arith.addf %53, %55 : vector<8x32xf32>
    %57 = arith.negf %56 : vector<8x32xf32>
    %58 = math.exp %57 : vector<8x32xf32>
    %cst_38 = arith.constant 1.000000e+00 : f32
    %59 = vector.broadcast %cst_38 : f32 to vector<8x32xf32>
    %60 = arith.addf %59, %58 : vector<8x32xf32>
    %61 = arith.divf %59, %60 : vector<8x32xf32>
    %62 = arith.mulf %51, %61 : vector<8x32xf32>
    %63 = arith.maximumf %43, %62 : vector<8x32xf32>
    %c0_39 = arith.constant 0 : index
    %c0_40 = arith.constant 0 : index
    %c0_41 = arith.constant 0 : index
    %64 = vector.load %arg15[%c0_39, %c0_40, %c0_41] : memref<1x8x32xf32, #tpu.memory_space<vmem>>, vector<1x8x32xf32>
    %65 = vector.shape_cast %64 : vector<1x8x32xf32> to vector<8x32xf32>
    %66 = vector.shape_cast %63 : vector<8x32xf32> to vector<1x8x32xf32>
    tpu.vector_store %arg15[%c0_39, %c0_40, %c0_41], %66 {strides = array<i32>} : memref<1x8x32xf32, #tpu.memory_space<vmem>>, vector<1x8x32xf32>,
    return
  }
  func.func @transform_0(%arg0: i32) -> (i32, i32) {
    %c0_i32 = arith.constant 0 : i32
    %c0_i32_0 = arith.constant 0 : i32
    %c0_i32_1 = arith.constant 0 : i32
    return %c0_i32, %c0_i32_0 : i32, i32
  }
  func.func @transform_1(%arg0: i32) -> (i32, i32, i32) {
    %c0_i32 = arith.constant 0 : i32
    %c0_i32_0 = arith.constant 0 : i32
    %c0_i32_1 = arith.constant 0 : i32
    return %arg0, %c0_i32, %c0_i32_0 : i32, i32, i32
  }
  func.func @transform_2(%arg0: i32) -> (i32, i32) {
    %c0_i32 = arith.constant 0 : i32
    %c0_i32_0 = arith.constant 0 : i32
    %c0_i32_1 = arith.constant 0 : i32
    return %c0_i32, %c0_i32_0 : i32, i32
  }
  func.func @transform_3(%arg0: i32) -> (i32, i32) {
    %c0_i32 = arith.constant 0 : i32
    %c0_i32_0 = arith.constant 0 : i32
    %c0_i32_1 = arith.constant 0 : i32
    return %c0_i32, %c0_i32_0 : i32, i32
  }
  func.func @transform_4(%arg0: i32) -> (i32, i32) {
    %c0_i32 = arith.constant 0 : i32
    %c0_i32_0 = arith.constant 0 : i32
    %c0_i32_1 = arith.constant 0 : i32
    return %c0_i32, %c0_i32_0 : i32, i32
  }
  func.func @transform_5(%arg0: i32) -> (i32, i32) {
    %c0_i32 = arith.constant 0 : i32
    %c0_i32_0 = arith.constant 0 : i32
    %c0_i32_1 = arith.constant 0 : i32
    return %c0_i32, %c0_i32_0 : i32, i32
  }
  func.func @transform_6(%arg0: i32) -> (i32, i32) {
    %c0_i32 = arith.constant 0 : i32
    %c0_i32_0 = arith.constant 0 : i32
    %c0_i32_1 = arith.constant 0 : i32
    return %c0_i32, %c0_i32_0 : i32, i32
  }
  func.func @transform_7(%arg0: i32) -> (i32, i32) {
    %c0_i32 = arith.constant 0 : i32
    %c0_i32_0 = arith.constant 0 : i32
    %c0_i32_1 = arith.constant 0 : i32
    return %c0_i32, %c0_i32_0 : i32, i32
  }
  func.func @transform_8(%arg0: i32) -> (i32, i32) {
    %c0_i32 = arith.constant 0 : i32
    %c0_i32_0 = arith.constant 0 : i32
    %c0_i32_1 = arith.constant 0 : i32
    return %c0_i32, %c0_i32_0 : i32, i32
  }
  func.func @transform_9(%arg0: i32) -> (i32, i32) {
    %c0_i32 = arith.constant 0 : i32
    %c0_i32_0 = arith.constant 0 : i32
    %c0_i32_1 = arith.constant 0 : i32
    return %c0_i32, %c0_i32_0 : i32, i32
  }
  func.func @transform_10(%arg0: i32) -> (i32, i32) {
    %c0_i32 = arith.constant 0 : i32
    %c0_i32_0 = arith.constant 0 : i32
    %c0_i32_1 = arith.constant 0 : i32
    return %c0_i32, %c0_i32_0 : i32, i32
  }
  func.func @transform_11(%arg0: i32) -> (i32, i32) {
    %c0_i32 = arith.constant 0 : i32
    %c0_i32_0 = arith.constant 0 : i32
    %c0_i32_1 = arith.constant 0 : i32
    return %c0_i32, %c0_i32_0 : i32, i32
  }
  func.func @transform_12(%arg0: i32) -> (i32, i32) {
    %c0_i32 = arith.constant 0 : i32
    %c0_i32_0 = arith.constant 0 : i32
    %c0_i32_1 = arith.constant 0 : i32
    return %c0_i32, %c0_i32_0 : i32, i32
  }
  func.func @transform_13(%arg0: i32) -> (i32, i32) {
    %c0_i32 = arith.constant 0 : i32
    %c0_i32_0 = arith.constant 0 : i32
    %c0_i32_1 = arith.constant 0 : i32
    return %c0_i32, %c0_i32_0 : i32, i32
  }
  func.func @transform_14(%arg0: i32) -> (i32, i32, i32) {
    %c0_i32 = arith.constant 0 : i32
    %c0_i32_0 = arith.constant 0 : i32
    %c0_i32_1 = arith.constant 0 : i32
    return %arg0, %c0_i32, %c0_i32_0 : i32, i32, i32
  }
}

</mosaic_0001>

<bundles_post_ra>
// kernel: tpu_custom_call.1
= control target key start
LH: loop header
LB: loop body
LE: loop exit
PB: predicated region body
PF: predicated region fallthrough
CT: control target
= control target key end

     0   :  { %s2064_s0 = inlined_call_operand.hbm [shape: bf16[24,24], index: 0, kind: input, shape index: {}]   ;;  %s2065_s1 = inlined_call_operand.vmem [shape: bf16[2,24,16], index: 1, kind: input, shape index: {}]   ;;  %s2066_s2 = inlined_call_operand.hbm [shape: bf16[16,32], index: 2, kind: input, shape index: {}]   ;;  %s2067_s3 = inlined_call_operand.hbm [shape: bf16[16,32], index: 3, kind: input, shape index: {}]   ;;  %s2068_s4 = inlined_call_operand.vmem [shape: f32[1,32], index: 4, kind: input, shape index: {}]   ;;  %s2069_s5 = inlined_call_operand.vmem [shape: f32[1,32], index: 5, kind: input, shape index: {}]   ;;  %s2070_s6 = inlined_call_operand.vmem [shape: bf16[32,32], index: 6, kind: input, shape index: {}]   ;;  %s2071_s7 = inlined_call_operand.vmem [shape: bf16[32,32], index: 7, kind: input, shape index: {}]   ;;  %s2072_s8 = inlined_call_operand.vmem [shape: f32[1,32], index: 8, kind: input, shape index: {}]   ;;  %s2073_s9 = inlined_call_operand.vmem [shape: f32[1,32], index: 9, kind: input, shape index: {}]   ;;  %s2074_s10 = inlined_call_operand.vmem [shape: bf16[32,32], index: 10, kind: input, shape index: {}]   ;;  %s2075_s11 = inlined_call_operand.vmem [shape: bf16[32,32], index: 11, kind: input, shape index: {}]   ;;  %s2076_s12 = inlined_call_operand.vmem [shape: f32[1,32], index: 12, kind: input, shape index: {}]   ;;  %s2077_s13 = inlined_call_operand.vmem [shape: f32[1,32], index: 13, kind: input, shape index: {}]   ;;  %s2078_s14 = inlined_call_operand.hbm [shape: f32[2,8,32], index: 14, kind: output, shape index: {}]  }
   0x1   :  { %2092 = sst [smem:[#allocation20_spill]] %s2076_s12 }
   0x2   :  { %2093 = sst [smem:[#allocation21_spill]] %s2078_s14 }
   0x3   :  { %19 = vsyncpa [#allocation3], 0 }
   0x4   :  { %20 = vsyncpa [#allocation6], 0 }
   0x5   :  { %21 = vsyncpa [#allocation4], 0 }
   0x6   :  { %23 = vsyncpa [#allocation4 + $0x1], 0  ;;  %s1781_s29 = smov 0   ;;  %s1783_s30 = smov 0  }
   0x7   :  { %s1785_s15 = smov 0   ;;  %s1787_s16 = smov 0  }
   0x8 LB: > { %2094 = sst [smem:[#allocation12_spill]] %s1684_s29  ;;  %s1802_s17 = sadd.s32 4294967295, %s1696_s16   ;;  %s1696_s16 = sphi %s1787_s16, %s2121_s16   ;;  %s1692_s15 = sphi %s1785_s15, %s2124_s15   ;;  %s1688_s30 = sphi %s1783_s30, %s2123_s30   ;;  %s1684_s29 = sphi %s1781_s29, %s2122_s29  }
   0x9   : > { %2095 = sst [smem:[#allocation13_spill]] %s1688_s30  ;;  %s1266_s18 = sadd.s32 4294967294, %s1696_s16  }
   0xa   : > { %2096 = sst [smem:[#allocation14_spill]] %s1692_s15  ;;  %s1806_s19 = sadd.s32 1, %s1696_s16  }
   0xb   : > { %2097 = sst [smem:[#allocation15_spill]] %s1696_s16  ;;  %s335_s20 = sadd.s32 1, %s1692_s15 }
   0xc   : > { %2098 = sst [smem:[#allocation16_spill]] %s1806_s19  ;;  %s332_s21 = ssub.s32 %s1696_s16, %s1806_s19 }
   0xd   : > { %p345_p0 = scmp.ne.s32.totalorder %s1692_s15, %s1688_s30  ;;  %p333_p1 = scmp.eq.s32.totalorder %s332_s21, 0 }
   0xe   : > { %p346_p2 = scmp.eq.s32.totalorder %s1802_s17, 1  ;;  %p351_p3 = scmp.ne.s32.totalorder %s1688_s30, %s1684_s29 }
   0xf   : > { %p352_p4 = scmp.eq.s32.totalorder %s1266_s18, 1  ;;  %p1267_p7 = scmp.ge.s32.totalorder %s1696_s16, 1 }
  0x10   : > { %s1817_s22 = scalar_select %p333_p1, %s1692_s15, %s335_s20  }
  0x11   : > { %p1819_p5 = por %p346_p2, %p345_p0  ;;  %p1823_p6 = por %p352_p4, %p351_p3 }
  0x12   : > { %2099 = sst [smem:[#allocation17_spill]] %s1817_s22  ;;  %p359_p8 = scmp.lt.s32.totalorder %s1696_s16, 3 }
  0x13   : > { %s2100_s23 = scalar_select %p1819_p5, 1, 0 }
  0x14   : > { %s2102_s24 = scalar_select %p1823_p6, 1, 0 }
  0x15   : > { %2101 = sst [smem:[#allocation18_spill]] %s2100_s23  ;;  %p2085_p9 = scmp.eq.s32.totalorder %s1802_s17, 0 }
  0x16   : > { %2103 = sst [smem:[#allocation19_spill]] %s2102_s24  ;;  %p1830_p10 = pnand %p1267_p7, %p359_p8 }
  0x17   : > { %s1698_s26 = smov [#allocation5]   ;;  %s1699_s18 = smov [#allocation2]  }
  0x18   : > { %s2104_s25 = scalar_select %p1830_p10, 1, 0 }
  0x19   : > { %p1440_p11 = pneg %p1830_p10  ;;  %s384_s27 = sshll.u32 %s1698_s26, 4  ;;  %s1836_s27 = int_to_ptr.vmem [resolvable:$true] %s384_s27 }
  0x1a   : > { %s371_s20 = sshll.u32 %s1699_s18, 4  ;;  %s1700_s21 = smov [#allocation7]   ;;  %s1844_s20 = int_to_ptr.vmem [resolvable:$true] %s371_s20 }
  0x1b   : > { %p1840_p12 = pnand %p2085_p9, %p1440_p11  ;;  %s1846_s22 = sshll.u32 %s1700_s21, 4  ;;  %s398_s22 = int_to_ptr.vmem [resolvable:$true] %s1846_s22 }
  0x1c   : > { %s1542_s24 = scalar_lea.hbm %s2066_s2, 128 }
  0x1d   : > { %p1543_p13 = scmp.ne.s32.totalorder %s2066_s2, %s1542_s24  ;;  %p1856_p0 = pneg %p1840_p12 }
  0x1e   : > { %p1549_p3 = scmp.lt.u32.totalorder %s1542_s24, %s2066_s2 }
  0x1f   : > { %p1545_p1 = pnand %p1856_p0, %p1543_p13 }
  0x21   : > { %p1546_p2 = pneg %p1545_p1 }
  0x23   : > { %p1551_p4 = pnand %p1549_p3, %p1546_p2 }
  0x25   : > { %1554 = shalt.err (!%p1551_p4)
}
  0x26   : > { %s1555_s29 = scalar_lea.vmem %s1836_s27, 128  ;;  %p1563_p9 = scmp.lt.s32.totalorder %s1836_s27, %s1836_s27 }
  0x27   : > { %p1556_p7 = scmp.ne.s32.totalorder %s1836_s27, %s1555_s29  ;;  %p1564_p6 = scmp.lt.s32.totalorder %s1555_s29, %s1555_s29 }
  0x29   : > { %p1558_p8 = pnand %p1556_p7, %p1856_p0  ;;  %p1565_p13 = por %p1564_p6, %p1563_p9 }
  0x2b   : > { %p1559_p11 = pneg %p1558_p8 }
  0x2d   : > { %p1566_p1 = pnand %p1565_p13, %p1559_p11 }
  0x2f   : > { %1569 = shalt.err (!%p1566_p1)
}
  0x30   : > { %s1701_s15 = smov 64   ;;  %s1702_s19 = smov 4  }
  0x31   : > { %1446 = dma.hbm_to_vmem [thread:$0]  (!%p1840_p12), %s2066_s2, 128, %s1836_s27, [#allocation6], %s1701_s15, %s1701_s15, %s1702_s19  }
  0x32   : > { %s1570_s29 = scalar_lea.hbm %s2064_s0, 192 }
  0x33   : > { %p1571_p6 = scmp.ne.s32.totalorder %s2064_s0, %s1570_s29  ;;  %p1577_p3 = scmp.lt.u32.totalorder %s1570_s29, %s2064_s0 }
  0x35   : > { %p1573_p9 = pnand %p1571_p6, %p1856_p0 }
  0x37   : > { %p1574_p2 = pneg %p1573_p9 }
  0x39   : > { %p1579_p4 = pnand %p1577_p3, %p1574_p2 }
  0x3b   : > { %1582 = shalt.err (!%p1579_p4)
}
  0x3c   : > { %s1583_s27 = scalar_lea.vmem %s1844_s20, 192  ;;  %p1591_p13 = scmp.lt.s32.totalorder %s1844_s20, %s1844_s20 }
  0x3d   : > { %p1584_p7 = scmp.ne.s32.totalorder %s1844_s20, %s1583_s27  ;;  %p1592_p1 = scmp.lt.s32.totalorder %s1583_s27, %s1583_s27 }
  0x3f   : > { %p1586_p8 = pnand %p1584_p7, %p1856_p0  ;;  %p1593_p6 = por %p1592_p1, %p1591_p13 }
  0x41   : > { %p1587_p11 = pneg %p1586_p8 }
  0x43   : > { %p1594_p9 = pnand %p1593_p6, %p1587_p11 }
  0x45   : > { %1597 = shalt.err (!%p1594_p9)
}
  0x46   : > { %1443 = dma.hbm_to_vmem [thread:$0]  (!%p1840_p12), %s2064_s0, 192, %s1844_s20, [#allocation3], %s1701_s15, %s1701_s15, %s1702_s19  }
  0x47   : > { %s1598_s24 = scalar_lea.hbm %s2067_s3, 128 }
  0x48   : > { %p1599_p2 = scmp.ne.s32.totalorder %s2067_s3, %s1598_s24  ;;  %p1605_p7 = scmp.lt.u32.totalorder %s1598_s24, %s2067_s3 }
  0x4a   : > { %p1601_p3 = pnand %p1599_p2, %p1856_p0 }
  0x4c   : > { %p1602_p4 = pneg %p1601_p3 }
  0x4e   : > { %p1607_p8 = pnand %p1605_p7, %p1602_p4 }
  0x50   : > { %1610 = shalt.err (!%p1607_p8)
}
  0x51   : > { %s1611_s27 = scalar_lea.vmem %s398_s22, 128  ;;  %p1619_p6 = scmp.lt.s32.totalorder %s398_s22, %s398_s22 }
  0x52   : > { %p1612_p11 = scmp.ne.s32.totalorder %s398_s22, %s1611_s27  ;;  %p1620_p9 = scmp.lt.s32.totalorder %s1611_s27, %s1611_s27 }
  0x54   : > { %p1614_p13 = pnand %p1612_p11, %p1856_p0  ;;  %p1621_p5 = por %p1620_p9, %p1619_p6 }
  0x56   : > { %p1615_p1 = pneg %p1614_p13 }
  0x58   : > { %p1622_p10 = pnand %p1621_p5, %p1615_p1 }
  0x5a   : > { %1625 = shalt.err (!%p1622_p10)
}
  0x5b   : > { %1449 = dma.hbm_to_vmem [thread:$0]  (!%p1840_p12), %s2067_s3, 128, %s398_s22, [#allocation6], %s1701_s15, %s1701_s15, %s1702_s19  }
  0x5c   : > { %p2107_p2 = scmp.ne.s32.totalorder %s2104_s25, 0 }
  0x5d   : > { %p2108_p0 = scmp.eq.s32.totalorder (!%p2107_p2), %s1802_s17, 0 }
  0x5e   : > { %451 = sbr.rel (%p2107_p2) target bundleno = 1546 (0x60a), region = 76 }
  0x65   : > { %1671 = dma.done.wait (%p2108_p0), [#allocation3], 192   ;;  %p2109_p3 = pmov %p2108_p0 }
  0x66   : > { %p2110_p5 = pmov %p2108_p0 }
  0x67   : > { %1673 = vsyncadd (%p2109_p3), [#allocation3], 4294967104 }
  0x68   : > { %1675 = dma.done.wait (%p2110_p5), [#allocation6], 256   ;;  %p2111_p10 = pmov %p2108_p0 }
  0x69   : > { %p505_p4 = scmp.lt.s32.totalorder %s1802_s17, 1  ;;  %vm541_vm0 = vcmask 1043456   ;;  %v511_v2 = vld [vmem:[#allocation2] sm:$0xf]  ;;  %v1943_v3 = vld [vmem:[#allocation2 + $0x4] sm:$0xf] }
  0x6a   : > { %1677 = vsyncadd (%p2111_p10), [#allocation6], 4294967040  ;;  %vm534_vm1 = vcmask 195584   ;;  %v1278_v5 = vcombine.low %v511_v2, %v1943_v3  ;;  %v1949_v6 = vld [vmem:[#allocation2 + $0x8] ss:$0 sps:$4 sm:$0xff]   ;;  %v1504_v7 = vld [vmem:[#allocation5] sm:$0xff]  }
  0x6b   : > { %s506_s16 = scalar_select %p505_p4, %s1802_s17, 1  ;;  %1363 = vmatprep.subr.bf16.mxu1 %v1504_v7  ;;  %v1505_v8 = vld [vmem:[#allocation7] sm:$0xff]   ;;  %vm610_vm2 = vcmask 130048   ;;  %v1506_v15 = vld [vmem:[%s2070_s6] sm:$0xff]   ;;  %v1508_v51 = vld [vmem:[%s2070_s6 + $0x8] sm:$0xff]   ;;  %vm827_vm3 = vcmask 261120  }
  0x6c   : > { %1359 = vmatprep.mubr.msk.bf16.mxu0 %vm534_vm1, %v1278_v5  ;;  %1364 = vmatpush3.bf16.msra.mxu1 %v1504_v7  ;;  %v1288_v20 = vld [vmem:[%s2069_s5] ss:$0 sm:$0xff]  ;;  %v1509_v52 = vld [vmem:[%s2071_s7 + $0x8] sm:$0xff]   ;;  %v1703_v59 = vmov 0.0   ;;  %vm1704_vm4 = vmmov 0   ;;  %s2112_s27 = sld [smem:[#allocation13_spill]] }
  0x6d   : > { %s1425_s22 = smul.u32 12, %s506_s16  ;;  %1369 = vmatprep.subr.bf16.mxu1 %v1505_v8  ;;  %v1284_v37 = vld [vmem:[%s2068_s4] ss:$0 sm:$0xff]  ;;  %s2113_s28 = sld [smem:[#allocation20_spill]] }
  0x6e   : > { %v1507_v49 = vld [vmem:[%s2071_s7] sm:$0xff]   ;;  %s2114_s25 = sld [smem:[#allocation18_spill]]  ;;  %s2115_s24 = sld [smem:[#allocation21_spill]] }
  0x6f   : > { %s509_s15 = scalar_lea.vmem %s2065_s1, %s1425_s22  ;;  %v1510_v60 = vld [vmem:[%s2074_s10] sm:$0xff]   ;;  %s1705_s21 = smov [#allocation8]  }
  0x70   : > { %v1500_v0 = vld [vmem:[%s509_s15] sm:$0xff]   ;;  %v1501_v1 = vld [vmem:[%s509_s15 + $0x8] ss:$0 sps:$4 sm:$0xff]   ;;  %s1321_s15 = sshll.u32 %s1802_s17, 7  ;;  %s1630_s29 = sshll.u32 %s1705_s21, 4  ;;  %s1631_s29 = int_to_ptr.vmem [resolvable:$false] %s1630_s29 }
  0x71   : > { %1355 = vmatprep.subr.bf16.mxu0 %v1500_v0  ;;  %v543_v4 = vsel %vm541_vm0, %v1501_v1, 0  ;;  %v1302_v61 = vld [vmem:[%s2073_s9] ss:$0 sm:$0xff] }
  0x72   : > { %1356 = vmatpush3.bf16.msra.mxu0 %v1500_v0  ;;  %s502_s20 = sand.u32 1, %s2112_s27   ;;  %s1632_s27 = scalar_lea.vmem %s1631_s29, 256 }
  0x73   : > { %1423 = vmatprep.subr.msk.bf16.mxu0 %vm541_vm0, %v1501_v1  ;;  %s1276_s12 = sshll.u32 %s502_s20, 3  ;;  %s1163_s18 = scalar_lea.sflag [#allocation4], %s502_s20 }
  0x74   : > { %s504_s19 = scalar_lea.vmem [#allocation8], %s1276_s12  ;;  %s2021_s26 = scalar_lea.hbm %s2115_s24, %s1321_s15 }
  0x75   : > { %s1176_s14 = sshll.u32 %s504_s19, 4  ;;  %p2116_p7 = scmp.ne.s32.totalorder %s2114_s25, 0  ;;  %s2023_s14 = int_to_ptr.vmem [resolvable:$true] %s1176_s14 }
  0x76   : > { %1358 = vmatpush3.bf16.msra.mxu0 %v543_v4  ;;  %s1626_s17 = scalar_lea.vmem %s2023_s14, 128  ;;  %p1633_p13 = scmp.lt.s32.totalorder %s2023_s14, %s1631_s29 }
  0x77   : > { %p1627_p12 = scmp.ne.s32.totalorder %s2023_s14, %s1626_s17  ;;  %p1634_p1 = scmp.lt.s32.totalorder %s1632_s27, %s1626_s17 }
  0x79   : > { %1360 = vmatmul.mubr.msk.bf16.vlgmr.msra.gmra.mrb[0].mxu0 %vm534_vm1, %v1949_v6  ;;  %p1628_p8 = pnand %p1627_p12, %p2116_p7  ;;  %p1635_p6 = por %p1634_p1, %p1633_p13 }
  0x7a   : > { %1379 = vmatprep.mubr.msk.bf16.mxu0 %vm534_vm1, %v1278_v5 }
  0x7b   : > { %p1629_p11 = pneg %p1628_p8 }
  0x7d   : > { %p1636_p9 = pnand %p1635_p6, %p1629_p11 }
 0x14c   : > { %v1361_v9 = vpop.f32.mrb[0].mxu0 }
 0x14d   : > { %v579_v10 = vpop.f32.mrb[1].mxu0  ;;  %v594_v14 = vpack.c.bf16 %v1361_v9, %v1361_v9 }
 0x14e   : > { %v1362_v11 = vpop.f32.mrb[2].mxu0 }
 0x14f   : > { %v582_v12 = vpop.f32.mrb[3].mxu0 }
 0x150   : > { %v593_v13 = vpack.c.bf16 %v582_v12, %v579_v10 }
 0x152   : > { %1365 = vmatprep.mubr.msk.bf16.mxu1 %vm610_vm2, %v593_v13 }
 0x153   : > { %1366 = vmatmul.mubr.msk.bf16.vlgmr.msra.gmra.mrb[0].mxu1 %vm610_vm2, %v594_v14 }
 0x154   : > { %1370 = vmatpush3.bf16.msra.mxu1 %v1505_v8  ;;  %1371 = vmatprep.mubr.msk.bf16.mxu1 %vm610_vm2, %v593_v13 }
 0x155   : > { %1383 = vmatprep.subr.bf16.mxu1 %v1506_v15 }
 0x15b   : > { %1372 = vmatmul.mubr.msk.bf16.vlgmr.msra.gmra.mrb[4].mxu1 %vm610_vm2, %v594_v14 }
 0x15c   : > { %1384 = vmatpush3.bf16.msra.mxu1 %v1506_v15 }
 0x15d   : > { %1385 = vmatprep.subr.bf16.mxu1 %v1508_v51 }
 0x160   : > { %1386 = vmatpush3.bf16.msra.mxu1 %v1508_v51 }
 0x161   : > { %1399 = vmatprep.subr.bf16.mxu1 %v1703_v59 }
 0x226   : > { %v1367_v16 = vpop.f32.mrb[0].mxu1 }
 0x227   : > { %v651_v17 = vpop.f32.mrb[1].mxu1  ;;  %v660_v38 = vadd.f32 %v1367_v16, %v1284_v37 }
 0x228   : > { %v1368_v18 = vpop.f32.mrb[2].mxu1  ;;  %v652_v40 = vadd.f32 %v1284_v37, %v651_v17 }
 0x229   : > { %v654_v19 = vpop.f32.mrb[3].mxu1 }
 0x22a   : > { %v655_v43 = vadd.f32 %v1284_v37, %v654_v19  ;;  %v1297_v19 = vld [vmem:[%s2072_s8] ss:$0 sm:$0xff] }
 0x22e   : > { %v1373_v21 = vpop.f32.mrb[4].mxu1 }
 0x22f   : > { %v723_v22 = vadd.f32 %v1373_v21, %v1288_v20  ;;  %v714_v23 = vpop.f32.mrb[5].mxu1 }
 0x230   : > { %v715_v24 = vadd.f32 %v1288_v20, %v714_v23  ;;  %v1374_v25 = vpop.f32.mrb[6].mxu1 }
 0x231   : > { %v1294_v26 = vmul.f32 -1.442695, %v723_v22  ;;  %v717_v27 = vpop.f32.mrb[7].mxu1 }
 0x232   : > { %v1292_v28 = vmul.f32 -1.442695, %v715_v24  ;;  %v718_v29 = vadd.f32 %v1288_v20, %v717_v27 }
 0x233   : > { %1514 = vpow2.f32 %v1294_v26 }
 0x234   : > { %1516 = vpow2.f32 %v1292_v28  ;;  %v1293_v30 = vmul.f32 -1.442695, %v718_v29 }
 0x236   : > { %1518 = vpow2.f32 %v1293_v30 }
 0x23d   : > { %v1515_v31 = vpop.eup %1514 }
 0x23e   : > { %v1517_v32 = vpop.eup %1516  ;;  %v739_v33 = vadd.f32 1.0, %v1515_v31 }
 0x23f   : > { %v737_v34 = vadd.f32 1.0, %v1517_v32  ;;  %v1511_v32 = vld [vmem:[%s2075_s11] sm:$0xff]  }
 0x240   : > { %v1519_v35 = vpop.eup %1518  ;;  %1520 = vrcp.f32 %v739_v33  ;;  %v1512_v33 = vld [vmem:[%s2074_s10 + $0x8] sm:$0xff]  }
 0x241   : > { %1522 = vrcp.f32 %v737_v34  ;;  %v738_v36 = vadd.f32 1.0, %v1519_v35  ;;  %v1513_v34 = vld [vmem:[%s2075_s11 + $0x8] sm:$0xff]  }
 0x243   : > { %1524 = vrcp.f32 %v738_v36 }
 0x24a   : > { %v1521_v39 = vpop.eup %1520 }
 0x24b   : > { %v1523_v41 = vpop.eup %1522  ;;  %v748_v42 = vmul.f32 %v1521_v39, %v660_v38 }
 0x24c   : > { %v746_v44 = vmul.f32 %v1523_v41, %v652_v40 }
 0x24d   : > { %v1525_v45 = vpop.eup %1524  ;;  %v750_v48 = vpack.c.bf16 %v748_v42, %v748_v42 }
 0x24e   : > { %v1963_v46 = vmul.f32 %v1525_v45, %v655_v43 }
 0x24f   : > { %v752_v50 = vsel %vm541_vm0, %v750_v48, 0 }
 0x250   : > { %v749_v47 = vpack.c.bf16 %v1963_v46, %v746_v44 }
 0x252   : > { %1375 = vmatprep.subr.bf16.mxu0 %v749_v47 }
 0x253   : > { %1376 = vmatpush3.bf16.msra.mxu0 %v749_v47 }
 0x254   : > { %1424 = vmatprep.subr.msk.bf16.mxu0 %vm541_vm0, %v750_v48 }
 0x257   : > { %1378 = vmatpush3.bf16.msra.mxu0 %v752_v50 }
 0x258   : > { %1391 = vmatprep.subr.bf16.mxu0 %v1507_v49 }
 0x25a   : > { %1380 = vmatmul.mubr.msk.bf16.vlgmr.msra.gmra.mrb[4].mxu0 %vm534_vm1, %v1949_v6 }
 0x25b   : > { %1392 = vmatpush3.bf16.msra.mxu0 %v1507_v49 }
 0x25c   : > { %1393 = vmatprep.subr.bf16.mxu0 %v1509_v52 }
 0x25f   : > { %1394 = vmatpush3.bf16.msra.mxu0 %v1509_v52 }
 0x260   : > { %1407 = vmatprep.subr.bf16.mxu0 %v1703_v59 }
 0x32d   : > { %v1381_v53 = vpop.f32.mrb[4].mxu0 }
 0x32e   : > { %v788_v54 = vpop.f32.mrb[5].mxu0  ;;  %v803_v58 = vpack.c.bf16 %v1381_v53, %v1381_v53  ;;  %v1311_v53 = vld [vmem:[%s2113_s28] ss:$0 sm:$0xff] }
 0x32f   : > { %v1382_v55 = vpop.f32.mrb[6].mxu0 }
 0x330   : > { %v791_v56 = vpop.f32.mrb[7].mxu0 }
 0x331   : > { %v802_v57 = vpack.c.bf16 %v791_v56, %v788_v54 }
 0x333   : > { %1387 = vmatprep.mubr.msk.bf16.mxu1 %vm827_vm3, %v802_v57  ;;  %1395 = vmatprep.mubr.msk.bf16.mxu0 %vm827_vm3, %v802_v57 }
 0x334   : > { %1388 = vmatmul.mubr.msk.bf16.vlgmr.msra.gmra.mrb[8].mxu1 %vm827_vm3, %v803_v58  ;;  %1396 = vmatmul.mubr.msk.bf16.vlgmr.msra.gmra.mrb[8].mxu0 %vm827_vm3, %v803_v58 }
 0x335   : > { %1403 = vmatprep.mubr.msk.bf16.mxu1 %vm1704_vm4, %v1703_v59  ;;  %1411 = vmatprep.mubr.msk.bf16.mxu0 %vm1704_vm4, %v1703_v59 }
 0x336   : > { %1408 = vmatpush3.bf16.msra.mxu0 %v1510_v60 }
 0x337   : > { %1409 = vmatprep.subr.bf16.mxu0 %v1703_v59 }
 0x33a   : > { %1410 = vmatpush3.bf16.msra.mxu0 %v1512_v33 }
 0x407   : > { %v1389_v62 = vpop.f32.mrb[8].mxu1  ;;  %v1397_v63 = vpop.f32.mrb[8].mxu0 }
 0x408   : > { %v948_v0 = vadd.f32 %v1397_v63, %v1302_v61  ;;  %v868_v1 = vpop.f32.mrb[9].mxu1  ;;  %v939_v2 = vpop.f32.mrb[9].mxu0  ;;  %v877_v20 = vadd.f32 %v1389_v62, %v1297_v19 }
 0x409   : > { %v940_v4 = vadd.f32 %v1302_v61, %v939_v2  ;;  %v1390_v5 = vpop.f32.mrb[10].mxu1  ;;  %v1398_v6 = vpop.f32.mrb[10].mxu0  ;;  %v869_v22 = vadd.f32 %v1297_v19, %v868_v1 }
 0x40a   : > { %v1309_v7 = vmul.f32 -1.442695, %v948_v0  ;;  %v871_v8 = vpop.f32.mrb[11].mxu1  ;;  %v942_v9 = vpop.f32.mrb[11].mxu0 }
 0x40b   : > { %v1307_v10 = vmul.f32 -1.442695, %v940_v4  ;;  %v943_v11 = vadd.f32 %v1302_v61, %v942_v9  ;;  %v872_v25 = vadd.f32 %v1297_v19, %v871_v8 }
 0x40c   : > { %1526 = vpow2.f32 %v1309_v7 }
 0x40d   : > { %1528 = vpow2.f32 %v1307_v10  ;;  %v1308_v12 = vmul.f32 -1.442695, %v943_v11 }
 0x40f   : > { %1530 = vpow2.f32 %v1308_v12 }
 0x416   : > { %v1527_v13 = vpop.eup %1526 }
 0x417   : > { %v1529_v14 = vpop.eup %1528  ;;  %v964_v15 = vadd.f32 1.0, %v1527_v13 }
 0x418   : > { %v962_v16 = vadd.f32 1.0, %v1529_v14 }
 0x419   : > { %v1531_v17 = vpop.eup %1530  ;;  %1532 = vrcp.f32 %v964_v15 }
 0x41a   : > { %1534 = vrcp.f32 %v962_v16  ;;  %v963_v18 = vadd.f32 1.0, %v1531_v17 }
 0x41c   : > { %1536 = vrcp.f32 %v963_v18 }
 0x423   : > { %v1533_v21 = vpop.eup %1532 }
 0x424   : > { %v1535_v23 = vpop.eup %1534  ;;  %v973_v24 = vmul.f32 %v1533_v21, %v877_v20 }
 0x425   : > { %v971_v26 = vmul.f32 %v1535_v23, %v869_v22 }
 0x426   : > { %v1537_v27 = vpop.eup %1536  ;;  %v975_v30 = vpack.c.bf16 %v973_v24, %v973_v24 }
 0x427   : > { %v972_v28 = vmul.f32 %v1537_v27, %v872_v25 }
 0x428   : > { %v981_v31 = vsel %vm541_vm0, %v975_v30, 0 }
 0x429   : > { %v974_v29 = vpack.c.bf16 %v972_v28, %v971_v26  ;;  %v976_v56 = vmax.f32 %v1963_v46, %v972_v28 }
 0x42b   : > { %1400 = vmatpush3.bf16.msra.mxu1 %v974_v29 }
 0x42c   : > { %1401 = vmatprep.subr.bf16.mxu1 %v1703_v59 }
 0x42f   : > { %1402 = vmatpush3.bf16.msra.mxu1 %v981_v31 }
 0x430   : > { %1415 = vmatprep.subr.bf16.mxu1 %v1703_v59 }
 0x432   : > { %1404 = vmatmul.mubr.msk.bf16.vlgmr.msra.gmra.mrb[12].mxu1 %vm534_vm1, %v1943_v3  ;;  %v1315_v3 = vld [vmem:[%s2077_s13] ss:$0 sm:$0xff] }
 0x433   : > { %1416 = vmatpush3.bf16.msra.mxu1 %v1511_v32  ;;  %1419 = vmatprep.mubr.msk.bf16.mxu1 %vm1704_vm4, %v1703_v59 }
 0x434   : > { %1417 = vmatprep.subr.bf16.mxu1 %v1703_v59 }
 0x437   : > { %1418 = vmatpush3.bf16.msra.mxu1 %v1513_v34 }
 0x505   : > { %v1017_v35 = vpop.f32.mrb[12].mxu1 }
 0x506   : > { %v1023_v36 = vpack.c.bf16 %v1017_v35, %v1017_v35  ;;  %v1405_v37 = vpop.f32.mrb[13].mxu1 }
 0x507   : > { %v1020_v38 = vpop.f32.mrb[14].mxu1 }
 0x508   : > { %v1406_v39 = vpop.f32.mrb[15].mxu1  ;;  %1412 = vmatmul.mubr.msk.bf16.vlgmr.msra.gmra.mrb[12].mxu0 %vm827_vm3, %v1023_v36  ;;  %1420 = vmatmul.mubr.msk.bf16.vlgmr.msra.gmra.mrb[16].mxu1 %vm827_vm3, %v1023_v36 }
 0x5db   : > { %v1084_v40 = vpop.f32.mrb[12].mxu0  ;;  %v1147_v41 = vpop.f32.mrb[16].mxu1 }
 0x5dc   : > { %v1148_v42 = vadd.f32 %v1315_v3, %v1147_v41  ;;  %v1413_v43 = vpop.f32.mrb[13].mxu0  ;;  %v1421_v44 = vpop.f32.mrb[17].mxu1  ;;  %v1085_v54 = vadd.f32 %v1311_v53, %v1084_v40 }
 0x5dd   : > { %v1087_v45 = vpop.f32.mrb[14].mxu0  ;;  %v1150_v47 = vpop.f32.mrb[18].mxu1 }
 0x5de   : > { %v1319_v48 = vmul.f32 -1.442695, %v1148_v42  ;;  %v1414_v49 = vpop.f32.mrb[15].mxu0  ;;  %v1422_v50 = vpop.f32.mrb[19].mxu1 }
 0x5e0   : > { %1538 = vpow2.f32 %v1319_v48 }
 0x5ea   : > { %v1539_v51 = vpop.eup %1538 }
 0x5eb   : > { %v1156_v52 = vadd.f32 1.0, %v1539_v51 }
 0x5ed   : > { %1540 = vrcp.f32 %v1156_v52 }
 0x5f7   : > { %v1541_v55 = vpop.eup %1540 }
 0x5f8   : > { %v1159_v57 = vmul.f32 %v1541_v55, %v1085_v54 }
 0x5fa   : > { %v1160_v58 = vmax.f32 %v976_v56, %v1159_v57 }
 0x5fc   : > { %1161 = vst.msk [vmem:[%s504_s19] sm:$0xff] %vm827_vm3, %v1160_v58 }
 0x5fd   : > { %1639 = shalt.err (!%p1636_p9)
}
 0x5fe   : > { %s1640_s20 = scalar_lea.hbm %s2021_s26, 128  ;;  %s1644_s22 = scalar_lea.hbm %s2115_s24, 256 }
 0x5ff   : > { %p1641_p2 = scmp.ne.s32.totalorder %s2021_s26, %s1640_s20  ;;  %p1645_p5 = scmp.lt.u32.totalorder %s2021_s26, %s2115_s24 }
 0x600   : > { %p1646_p10 = scmp.lt.u32.totalorder %s1644_s22, %s1640_s20  ;;  %p1648_p12 = scmp.lt.u32.totalorder %s1640_s20, %s2021_s26 }
 0x601   : > { %p1642_p0 = pnand %p1641_p2, %p2116_p7 }
 0x602   : > { %p1647_p4 = por %p1646_p10, %p1645_p5 }
 0x603   : > { %p1643_p3 = pneg %p1642_p0 }
 0x604   : > { %p1649_p8 = por %p1648_p12, %p1647_p4 }
 0x606   : > { %p1650_p11 = pnand %p1649_p8, %p1643_p3 }
 0x608   : > { %1653 = shalt.err (!%p1650_p11)
}
 0x609   : > { %1438 = dma.vmem_to_hbm [thread:$0]  (%p2116_p7), %s2023_s14, 128, %s2021_s26, %s1163_s18  }
 0x60a PF: > { %s2117_s19 = sld [smem:[#allocation15_spill]]  ;;  %s2118_s30 = sld [smem:[#allocation12_spill]] }
 0x60b   : > { %s2119_s23 = sld [smem:[#allocation19_spill]] }
 0x610   : > { %p1460_p13 = scmp.ge.s32.totalorder %s2117_s19, 2  ;;  %s1188_s17 = sand.u32 1, %s2118_s30  }
 0x611   : > { %p2120_p1 = scmp.ne.s32.totalorder %s2119_s23, 0  ;;  %s1189_s21 = scalar_lea.sflag [#allocation4], %s1188_s17 }
 0x613   : > { %p1451_p6 = pnand %p1460_p13, %p2120_p1 }
 0x615   : > { %1679 = dma.done.wait (!%p1451_p6), %s1189_s21, 128  }
 0x616   : > { %1681 = vsyncadd (!%p1451_p6), %s1189_s21, 4294967168  ;;  %s2121_s16 = sld [smem:[#allocation16_spill]]  ;;  %s2122_s29 = sld [smem:[#allocation13_spill]] }
 0x617   : > { %s2123_s30 = sld [smem:[#allocation14_spill]]  ;;  %s2124_s15 = sld [smem:[#allocation17_spill]] }
 0x61c   : > { %p26_p9 = scmp.ge.s32.totalorder %s2121_s16, 4  }
 0x61e   :  { %28 = sbr.rel (!%p26_p9) target bundleno = 8 (0x8), region = 124 }
 0x625   :  { %1194 = vsyncpa [#allocation3], 1 }
 0x626   :  { %1196 = vsyncpa [#allocation3 + $0x1], 1 }
 0x627   :  { %1197 = vsyncpa [#allocation6], 1 }
 0x628   :  { %1198 = vsyncpa [#allocation4], 1 }
 0x629   :  { %1200 = vsyncpa [#allocation4 + $0x1], 1 }

</bundles_post_ra>
